<compile_context>
chip_gen: v6e
topology: v6e:2x2x1
jax: 0.10.0
libtpu: 0.0.40
codegen_flags: <defaults>
</compile_context>

<pallas_src>
import numpy as np
import jax
import jax.numpy as jnp
from jax.experimental import pallas as pl
from jax.experimental.pallas import tpu as pltpu

N_NORM = 2          # hparams.awx_n_norm (> 1 branch); kernel specialized to n = 2
EPS = 1e-6          # n_norm clamp epsilon


def _round_up(a, m):
    return (a + m - 1) // m * m


# ----------------------------- Pallas kernel -------------------------------- #
def awx_kernel(x_ref, w_ref, b_ref, r_ref, o_ref, p_ref):
    # p = sigmoid(x @ W + b) ** 2 computed once per batch tile (first C tile) and
    # cached in VMEM scratch; reused for every C tile of the same batch tile.
    @pl.when(pl.program_id(1) == 0)
    def _():
        logits = jnp.dot(x_ref[...], w_ref[...],
                         preferred_element_type=jnp.float32)    # bf16 x bf16 -> f32
        s = jax.nn.sigmoid(logits + b_ref[...])                 # (TB, U_pad) f32
        p_ref[...] = (s * s).astype(p_ref.dtype)                # s**n, n == 2

    # n_norm over the units axis as a second MXU matmul (valid because R is {0,1};
    # padded U rows of R are zero, so padded units contribute nothing).
    t = jnp.dot(p_ref[...], r_ref[...], preferred_element_type=jnp.float32)
    o_ref[...] = jnp.sqrt(jnp.clip(t, EPS, 1.0 - EPS))          # (.)**(1/n), n == 2


def hierarchical_awx(x, W, bias, R_leaves, *, tb=256, tn=512):
    B, D = x.shape
    U, C = R_leaves.shape

    # Lane-dense padding of the units / class dims (128 lanes).
    U_pad = _round_up(U, 128)
    C_pad = _round_up(C, 128)
    TN = min(tn, C_pad)
    C_pad = _round_up(C_pad, TN)

    # Batch tiling with padding (never rely on B // TB dropping a tail tile).
    B_pad = _round_up(B, 16)            # bf16 sublane packing
    TB = min(tb, B_pad)
    B_pad = _round_up(B_pad, TB)

    # bf16 operands (exact for {0,1} R), f32 bias in padded-U layout.
    xb = jnp.pad(x.astype(jnp.bfloat16), ((0, B_pad - B), (0, 0)))
    Wb = jnp.pad(W.astype(jnp.bfloat16), ((0, 0), (0, U_pad - U)))
    bb = jnp.pad(bias.astype(jnp.float32).reshape(1, U), ((0, 0), (0, U_pad - U)))
    Rb = jnp.pad(R_leaves.astype(jnp.bfloat16), ((0, U_pad - U), (0, C_pad - C)))

    # NOTE: for very large U (thousands) on v7x (64 MiB VMEM), shrink tb or raise
    # vmem_limit_bytes via pltpu.CompilerParams; at these sizes the default is ample.
    out = pl.pallas_call(
        awx_kernel,
        out_shape=jax.ShapeDtypeStruct((B_pad, C_pad), jnp.float32),
        grid=(B_pad // TB, C_pad // TN),
        in_specs=[
            pl.BlockSpec((TB, D), lambda i, j: (i, 0)),        # x batch tile
            pl.BlockSpec((D, U_pad), lambda i, j: (0, 0)),     # W (resident)
            pl.BlockSpec((1, U_pad), lambda i, j: (0, 0)),     # bias (resident)
            pl.BlockSpec((U_pad, TN), lambda i, j: (0, j)),    # R C-tile
        ],
        out_specs=pl.BlockSpec((TB, TN), lambda i, j: (i, j)),
        scratch_shapes=[pltpu.VMEM((TB, U_pad), jnp.bfloat16)],   # cached s**n
        compiler_params=pltpu.CompilerParams(
            dimension_semantics=("parallel", "arbitrary"),
        ),
    )(xb, Wb, bb, Rb)
    return out[:B, :C]


# ------------------------- hierarchy construction --------------------------- #
def build_hierarchy():
    """Deterministic small class hierarchy (replaces hparams.class_adj + networkx)."""
    C = 12
    adj = np.zeros((C, C), dtype=np.float32)
    parents = {1: 0, 2: 0, 3: 0, 4: 1, 5: 1, 6: 2, 7: 2, 8: 3, 9: 3, 10: 3, 11: 3}
    for c, p in parents.items():
        adj[c, p] = 1.0

    leaves = adj.sum(0) == 0                      # nodes with no children
    reach = adj > 0                               # transitive closure (ancestors)
    for _ in range(C):
        reach = reach | ((reach.astype(np.int32) @ (adj > 0).astype(np.int32)) > 0)

    R = np.zeros((C, C), dtype=np.float32)
    leaf_idx = np.where(leaves)[0]
    R[leaf_idx, leaf_idx] = 1.0
    for i in leaf_idx:
        anc = np.where(reach[i])[0]
        R[i, anc] = 1.0
    return R[leaves]                              # (units, num_classes)


# --------------------------- pure-JAX references ----------------------------- #
def ref_forward_matched(x, W, bias, R_leaves):
    """Torch-module math (n > 1 branch) with the kernel's bf16 input rounding
    replicated, so the comparison is tight (f32 accumulation order aside)."""
    xb = x.astype(jnp.bfloat16).astype(jnp.float32)
    Wb = W.astype(jnp.bfloat16).astype(jnp.float32)
    s = jax.nn.sigmoid(xb @ Wb + bias)
    p = (s * s).astype(jnp.bfloat16).astype(jnp.float32)          # s**n, n == 2
    summed = jnp.sum(p[:, None, :] * R_leaves.T[None, :, :], axis=-1)
    return jnp.clip(summed, EPS, 1.0 - EPS) ** (1.0 / N_NORM)


def ref_forward_f32(x, W, bias, R_leaves):
    """Literal full-f32 torch form (broadcast + pow) as a semantic sanity check."""
    s = jax.nn.sigmoid(x @ W + bias)
    prod = s[:, None, :] * R_leaves.T[None, :, :]
    summed = jnp.sum(prod ** N_NORM, axis=-1)
    return jnp.clip(summed, EPS, 1.0 - EPS) ** (1.0 / N_NORM)


if __name__ == "__main__":
    key = jax.random.PRNGKey(0)
    k_x, k_w = jax.random.split(key)

    B = 8            # batch
    D = 32           # hparams.embedding_dim
    R_leaves = jnp.asarray(build_hierarchy())     # (U=8, C=12)
    U, C = R_leaves.shape

    limit = float(np.sqrt(6.0 / (D + U)))         # glorot uniform
    W = jax.random.uniform(k_w, (D, U), jnp.float32, minval=-limit, maxval=limit)
    bias = jnp.zeros((U,), jnp.float32)
    x = jax.random.normal(k_x, (B, D), jnp.float32)

    out = jax.block_until_ready(hierarchical_awx(x, W, bias, R_leaves))
    assert out.shape == (B, C)

    np.testing.assert_allclose(np.asarray(out),
                               np.asarray(ref_forward_matched(x, W, bias, R_leaves)),
                               rtol=1e-3, atol=1e-3)
    np.testing.assert_allclose(np.asarray(out),
                               np.asarray(ref_forward_f32(x, W, bias, R_leaves)),
                               rtol=3e-2, atol=3e-2)

    print("KERNEL_OK")
</pallas_src>

<mosaic_0001>
module attributes {stable_mosaic.version = 11 : i64} {
  func.func @awx_kernel(%arg0: i32, %arg1: i32, %arg2: memref<16x32xbf16, #tpu.memory_space<vmem>>, %arg3: memref<32x128xbf16, #tpu.memory_space<vmem>>, %arg4: memref<1x128xf32, #tpu.memory_space<vmem>>, %arg5: memref<128x128xbf16, #tpu.memory_space<vmem>>, %arg6: memref<16x128xf32, #tpu.memory_space<vmem>>, %arg7: memref<16x128xbf16, #tpu.memory_space<vmem>>) attributes {dimension_semantics = [#tpu.dimension_semantics<parallel>, #tpu.dimension_semantics<arbitrary>], iteration_bounds = array<i64: 1, 1>, scalar_prefetch = 0 : i64, scratch_operands = 1 : i64, tpu.core_type = #tpu.core_type<tc>, window_params = [{transform_indices = @transform_0, window_bounds = array<i64: 16, 32>}, {pipeline_mode = #tpu.pipeline_mode<synchronous>, transform_indices = @transform_1, window_bounds = array<i64: 32, 128>}, {pipeline_mode = #tpu.pipeline_mode<synchronous>, transform_indices = @transform_2, window_bounds = array<i64: 1, 128>}, {transform_indices = @transform_3, window_bounds = array<i64: 128, 128>}, {transform_indices = @transform_4, window_bounds = array<i64: 16, 128>}]} {
    %c0_i32 = arith.constant 0 : i32
    %0 = arith.cmpi eq, %arg1, %c0_i32 : i32
    %1 = arith.extui %0 : i1 to i32
    %c0_i32_0 = arith.constant 0 : i32
    %2 = arith.cmpi ne, %1, %c0_i32_0 : i32
    scf.if %2 {
      %c0_8 = arith.constant 0 : index
      %c0_9 = arith.constant 0 : index
      %12 = vector.load %arg2[%c0_8, %c0_9] : memref<16x32xbf16, #tpu.memory_space<vmem>>, vector<16x32xbf16>
      %c0_10 = arith.constant 0 : index
      %c0_11 = arith.constant 0 : index
      %13 = vector.load %arg3[%c0_10, %c0_11] : memref<32x128xbf16, #tpu.memory_space<vmem>>, vector<32x128xbf16>
      %cst_12 = arith.constant dense<0.000000e+00> : vector<16x128xf32>
      %14 = tpu.matmul %12, %13, %cst_12 {dimension_numbers = #tpu.dot_dimension_numbers<[1], [0], [0], [1], [0, 0, 1, 1], [], []>} : vector<16x32xbf16>, vector<32x128xbf16>, vector<16x128xf32> -> vector<16x128xf32>
      %c0_13 = arith.constant 0 : index
      %c0_14 = arith.constant 0 : index
      %15 = vector.load %arg4[%c0_13, %c0_14] : memref<1x128xf32, #tpu.memory_space<vmem>>, vector<1x128xf32>
      %16 = vector.broadcast %15 : vector<1x128xf32> to vector<16x128xf32>
      %17 = arith.addf %14, %16 : vector<16x128xf32>
      %18 = arith.negf %17 : vector<16x128xf32>
      %19 = math.exp %18 : vector<16x128xf32>
      %cst_15 = arith.constant 1.000000e+00 : f32
      %20 = vector.broadcast %cst_15 : f32 to vector<16x128xf32>
      %21 = arith.addf %20, %19 : vector<16x128xf32>
      %22 = arith.divf %20, %21 : vector<16x128xf32>
      %23 = arith.mulf %22, %22 : vector<16x128xf32>
      %24 = arith.truncf %23 : vector<16x128xf32> to vector<16x128xbf16>
      %c0_16 = arith.constant 0 : index
      %c0_17 = arith.constant 0 : index
      %25 = vector.load %arg7[%c0_16, %c0_17] : memref<16x128xbf16, #tpu.memory_space<vmem>>, vector<16x128xbf16>
      tpu.vector_store %arg7[%c0_16, %c0_17], %24 {strides = array<i32>} : memref<16x128xbf16, #tpu.memory_space<vmem>>, vector<16x128xbf16>,
    } else {
    }
    %c0 = arith.constant 0 : index
    %c0_1 = arith.constant 0 : index
    %3 = vector.load %arg7[%c0, %c0_1] : memref<16x128xbf16, #tpu.memory_space<vmem>>, vector<16x128xbf16>
    %c0_2 = arith.constant 0 : index
    %c0_3 = arith.constant 0 : index
    %4 = vector.load %arg5[%c0_2, %c0_3] : memref<128x128xbf16, #tpu.memory_space<vmem>>, vector<128x128xbf16>
    %cst = arith.constant dense<0.000000e+00> : vector<16x128xf32>
    %5 = tpu.matmul %3, %4, %cst {dimension_numbers = #tpu.dot_dimension_numbers<[1], [0], [0], [1], [0, 0, 1, 1], [], []>} : vector<16x128xbf16>, vector<128x128xbf16>, vector<16x128xf32> -> vector<16x128xf32>
    %cst_4 = arith.constant 9.99999997E-7 : f32
    %cst_5 = arith.constant 0.999998986 : f32
    %6 = vector.broadcast %cst_4 : f32 to vector<16x128xf32>
    %7 = arith.maximumf %6, %5 : vector<16x128xf32>
    %8 = vector.broadcast %cst_5 : f32 to vector<16x128xf32>
    %9 = arith.minimumf %8, %7 : vector<16x128xf32>
    %10 = math.sqrt %9 : vector<16x128xf32>
    %c0_6 = arith.constant 0 : index
    %c0_7 = arith.constant 0 : index
    %11 = vector.load %arg6[%c0_6, %c0_7] : memref<16x128xf32, #tpu.memory_space<vmem>>, vector<16x128xf32>
    tpu.vector_store %arg6[%c0_6, %c0_7], %10 {strides = array<i32>} : memref<16x128xf32, #tpu.memory_space<vmem>>, vector<16x128xf32>,
    return
  }
  func.func @transform_0(%arg0: i32, %arg1: i32) -> (i32, i32) {
    %c0_i32 = arith.constant 0 : i32
    %c0_i32_0 = arith.constant 0 : i32
    return %arg0, %c0_i32 : i32, i32
  }
  func.func @transform_1(%arg0: i32, %arg1: i32) -> (i32, i32) {
    %c0_i32 = arith.constant 0 : i32
    %c0_i32_0 = arith.constant 0 : i32
    %c0_i32_1 = arith.constant 0 : i32
    return %c0_i32, %c0_i32_0 : i32, i32
  }
  func.func @transform_2(%arg0: i32, %arg1: i32) -> (i32, i32) {
    %c0_i32 = arith.constant 0 : i32
    %c0_i32_0 = arith.constant 0 : i32
    %c0_i32_1 = arith.constant 0 : i32
    return %c0_i32, %c0_i32_0 : i32, i32
  }
  func.func @transform_3(%arg0: i32, %arg1: i32) -> (i32, i32) {
    %c0_i32 = arith.constant 0 : i32
    %c0_i32_0 = arith.constant 0 : i32
    return %c0_i32, %arg1 : i32, i32
  }
  func.func @transform_4(%arg0: i32, %arg1: i32) -> (i32, i32) {
    %c0_i32 = arith.constant 0 : i32
    return %arg0, %arg1 : i32, i32
  }
}

</mosaic_0001>

<bundles_post_ra>
// kernel: tpu_custom_call.1
= control target key start
LH: loop header
LB: loop body
LE: loop exit
PB: predicated region body
PF: predicated region fallthrough
CT: control target
= control target key end

     0   :  { %9 = vsyncpa [#allocation4], 0  ;;  %s549_s0 = inlined_call_operand.hbm [shape: bf16[16,32], index: 0, kind: input, shape index: {}]   ;;  %s550_s1 = inlined_call_operand.hbm [shape: bf16[32,128], index: 1, kind: input, shape index: {}]   ;;  %s551_s2 = inlined_call_operand.vmem [shape: f32[1,128], index: 2, kind: input, shape index: {}]   ;;  %s552_s3 = inlined_call_operand.hbm [shape: bf16[128,128], index: 3, kind: input, shape index: {}]   ;;  %s553_s4 = inlined_call_operand.hbm [shape: f32[16,128], index: 4, kind: output, shape index: {}]  }
   0x1   :  { %10 = vsyncpa [#allocation7], 0 }
   0x2   :  { %11 = vsyncpa [#allocation5], 0  ;;  %s499_s15 = smov [#allocation6]   ;;  %s500_s17 = smov [#allocation3]  }
   0x3   :  { %s29_s16 = sshll.u32 %s499_s15, 4  ;;  %s17_s18 = sshll.u32 %s500_s17, 4  ;;  %s30_s16 = int_to_ptr.vmem [resolvable:$true] %s29_s16  ;;  %s18_s18 = int_to_ptr.vmem [resolvable:$true] %s17_s18 }
   0x4   :  { %s421_s19 = scalar_lea.vmem %s30_s16, 256  ;;  %p426_p1 = scmp.lt.s32.totalorder %s30_s16, %s30_s16 }
   0x5   :  { %p422_p0 = scmp.ne.s32.totalorder %s30_s16, %s421_s19  ;;  %p427_p2 = scmp.lt.s32.totalorder %s421_s19, %s421_s19 }
   0x7   :  { %p428_p3 = por %p427_p2, %p426_p1 }
   0x9   :  { %p429_p4 = pnand %p428_p3, %p422_p0 }
   0xb   :  { %432 = shalt.err (!%p429_p4)
}
   0xc   :  { %s501_s20 = smov 64   ;;  %s502_s21 = smov 4  }
   0xd   :  { %35 = dma.hbm_to_vmem [thread:$0]  %s550_s1, 256, %s30_s16, [#allocation7], %s501_s20, %s501_s20, %s502_s21  }
   0xe   :  { %s441_s24 = scalar_lea.vmem %s18_s18, 128  ;;  %p446_p6 = scmp.lt.s32.totalorder %s18_s18, %s18_s18 }
   0xf   :  { %p442_p5 = scmp.ne.s32.totalorder %s18_s18, %s441_s24  ;;  %p447_p7 = scmp.lt.s32.totalorder %s441_s24, %s441_s24 }
  0x11   :  { %p448_p8 = por %p447_p7, %p446_p6 }
  0x13   :  { %p449_p9 = pnand %p448_p8, %p442_p5 }
  0x15   :  { %452 = shalt.err (!%p449_p9)
}
  0x16   :  { %23 = dma.hbm_to_vmem [thread:$0]  %s549_s0, 128, %s18_s18, [#allocation4], %s501_s20, %s501_s20, %s502_s21  }
  0x17   :  { %s503_s27 = smov [#allocation8]  }
  0x18   :  { %s43_s28 = sshll.u32 %s503_s27, 4  ;;  %s44_s28 = int_to_ptr.vmem [resolvable:$true] %s43_s28 }
  0x19   :  { %s461_s29 = scalar_lea.vmem %s44_s28, 1024  ;;  %p466_p11 = scmp.lt.s32.totalorder %s44_s28, %s44_s28 }
  0x1a   :  { %p462_p10 = scmp.ne.s32.totalorder %s44_s28, %s461_s29  ;;  %p467_p12 = scmp.lt.s32.totalorder %s461_s29, %s461_s29 }
  0x1c   :  { %p468_p13 = por %p467_p12, %p466_p11 }
  0x1e   :  { %p469_p0 = pnand %p468_p13, %p462_p10 }
  0x20   :  { %472 = shalt.err (!%p469_p0)
}
  0x21   :  { %49 = dma.hbm_to_vmem [thread:$0]  %s552_s3, 1024, %s44_s28, [#allocation7], %s501_s20, %s501_s20, %s502_s21  }
  0x22   :  { %493 = dma.done.wait [#allocation4], 128  }
  0x23   :  { %494 = vsyncadd [#allocation4], 4294967168 }
  0x24   :  { %495 = dma.done.wait [#allocation7], 1280  }
  0x25   :  { %496 = vsyncadd [#allocation7], 4294966016  ;;  %v504_v0 = vmov 0.0   ;;  %vm505_vm0 = vmmov 0   ;;  %v389_v1 = vld [vmem:[#allocation6 + $0x8] sm:$0xff]   ;;  %v390_v2 = vld [vmem:[#allocation6] sm:$0xff]  }
  0x26   :  { %351 = vmatprep.subr.bf16.mxu0 %v504_v0  ;;  %355 = vmatprep.mubr.msk.bf16.mxu0 %vm505_vm0, %v504_v0  ;;  %v391_v3 = vld [vmem:[#allocation3] sm:$0xff]   ;;  %vm94_vm1 = vcmask 261120   ;;  %v392_v4 = vld [vmem:[#allocation8 + $0x38] sm:$0xff]   ;;  %v393_v5 = vld [vmem:[#allocation8 + $0x30] sm:$0xff]  }
  0x27   :  { %359 = vmatprep.subr.bf16.mxu1 %v504_v0  ;;  %375 = vmatprep.mubr.msk.bf16.mxu1 %vm505_vm0, %v504_v0  ;;  %v394_v6 = vld [vmem:[#allocation8 + $0x28] sm:$0xff]   ;;  %v395_v7 = vld [vmem:[#allocation8 + $0x20] sm:$0xff]   ;;  %v396_v8 = vld [vmem:[#allocation8 + $0x18] sm:$0xff]  }
  0x28   :  { %352 = vmatpush3.bf16.msra.mxu0 %v389_v1  ;;  %360 = vmatpush3.bf16.msra.mxu1 %v392_v4  ;;  %v397_v9 = vld [vmem:[#allocation8 + $0x10] sm:$0xff]   ;;  %v398_v10 = vld [vmem:[#allocation8 + $0x8] sm:$0xff]   ;;  %v399_v11 = vld [vmem:[#allocation8] sm:$0xff]  }
  0x29   :  { %353 = vmatprep.subr.bf16.mxu0 %v504_v0  ;;  %361 = vmatprep.subr.bf16.mxu1 %v504_v0  ;;  %v314_v12 = vld [vmem:[%s551_s2] ss:$0 sm:$0xff]  ;;  %s506_s2 = smov [#allocation9]  }
  0x2a   :  { %s301_s5 = sshll.u32 %s506_s2, 4  ;;  %s302_s5 = int_to_ptr.vmem [resolvable:$true] %s301_s5 }
  0x2b   :  { %s473_s6 = scalar_lea.vmem %s302_s5, 256  ;;  %p478_p2 = scmp.lt.s32.totalorder %s302_s5, %s302_s5 }
  0x2c   :  { %354 = vmatpush3.bf16.msra.mxu0 %v390_v2  ;;  %362 = vmatpush3.bf16.msra.mxu1 %v393_v5  ;;  %p474_p1 = scmp.ne.s32.totalorder %s302_s5, %s473_s6  ;;  %p479_p3 = scmp.lt.s32.totalorder %s473_s6, %s473_s6 }
  0x2d   :  { %363 = vmatprep.subr.bf16.mxu1 %v504_v0 }
  0x2e   :  { %p480_p4 = por %p479_p3, %p478_p2 }
  0x2f   :  { %356 = vmatmul.mubr.msk.bf16.vlgmr.msra.gmra.mxu0 %vm94_vm1, %v391_v3 }
  0x30   :  { %364 = vmatpush3.bf16.msra.mxu1 %v394_v6  ;;  %p481_p5 = pnand %p480_p4, %p474_p1 }
  0x31   :  { %365 = vmatprep.subr.bf16.mxu1 %v504_v0 }
  0x34   :  { %366 = vmatpush3.bf16.msra.mxu1 %v395_v7 }
  0x35   :  { %367 = vmatprep.subr.bf16.mxu1 %v504_v0 }
  0x38   :  { %368 = vmatpush3.bf16.msra.mxu1 %v396_v8 }
  0x39   :  { %369 = vmatprep.subr.bf16.mxu1 %v504_v0 }
  0x3c   :  { %370 = vmatpush3.bf16.msra.mxu1 %v397_v9 }
  0x3d   :  { %371 = vmatprep.subr.bf16.mxu1 %v504_v0 }
  0x40   :  { %372 = vmatpush3.bf16.msra.mxu1 %v398_v10 }
  0x41   :  { %373 = vmatprep.subr.bf16.mxu1 %v504_v0 }
  0x44   :  { %374 = vmatpush3.bf16.msra.mxu1 %v399_v11 }
  0xef   :  { %v132_v13 = vpop.f32.mrf.mxu0 }
  0xf0   :  { %v133_v14 = vadd.f32 %v314_v12, %v132_v13 }
  0xf1   :  { %v357_v15 = vpop.f32.mrf.mxu0 }
  0xf2   :  { %v319_v16 = vmul.f32 -1.442695, %v133_v14 }
  0xf3   :  { %v135_v17 = vpop.f32.mrf.mxu0 }
  0xf4   :  { %401 = vpow2.f32 %v319_v16  ;;  %v136_v18 = vadd.f32 %v314_v12, %v135_v17 }
  0xf5   :  { %v358_v19 = vpop.f32.mrf.mxu0 }
  0xf6   :  { %v320_v20 = vmul.f32 -1.442695, %v136_v18 }
  0xf8   :  { %403 = vpow2.f32 %v320_v20 }
 0x101   :  { %v402_v21 = vpop.eup %401 }
 0x102   :  { %v145_v22 = vadd.f32 1.0, %v402_v21 }
 0x104   :  { %405 = vrcp.f32 %v145_v22 }
 0x105   :  { %v404_v23 = vpop.eup %403 }
 0x106   :  { %v146_v24 = vadd.f32 1.0, %v404_v23 }
 0x108   :  { %407 = vrcp.f32 %v146_v24 }
 0x111   :  { %v406_v25 = vpop.eup %405 }
 0x112   :  { %v151_v27 = vmul.f32 %v406_v25, %v406_v25 }
 0x115   :  { %v408_v26 = vpop.eup %407 }
 0x116   :  { %v152_v28 = vmul.f32 %v408_v26, %v408_v26 }
 0x118   :  { %v337_v29 = vpack.c.bf16 %v152_v28, %v151_v27 }
 0x11a   :  { %338 = vst [vmem:[#allocation2] sm:$0xff] %v337_v29  }
 0x121   :  { %v400_v30 = vld [vmem:[#allocation2] sm:$0xff]  }
 0x122   :  { %376 = vmatmul.mubr.bf16.vlgmr.msra.gmra.mxu1 %v400_v30 }
 0x1e2   :  { %v269_v31 = vpop.f32.mrf.mxu1 }
 0x1e3   :  { %v276_v32 = vmax.f32 %v269_v31, 1e-06 }
 0x1e4   :  { %v377_v33 = vpop.f32.mrf.mxu1 }
 0x1e5   :  { %v278_v34 = vmin.f32 %v276_v32, 0.999999 }
 0x1e6   :  { %v272_v35 = vpop.f32.mrf.mxu1 }
 0x1e7   :  { %409 = vrsqrt.f32 %v278_v34  ;;  %v277_v36 = vmax.f32 %v272_v35, 1e-06  ;;  %vm282_vm2 = vcmp.eq.f32.partialorder %v278_v34, inf  ;;  %v285_v41 = vand.u32 2147483648, %v278_v34 }
 0x1e8   :  { %v378_v37 = vpop.f32.mrf.mxu1  ;;  %vm284_vm3 = vcmp.eq.f32.partialorder %v278_v34, 0.0 }
 0x1e9   :  { %v279_v38 = vmin.f32 %v277_v36, 0.999999 }
 0x1eb   :  { %411 = vrsqrt.f32 %v279_v38  ;;  %vm289_vm4 = vcmp.eq.f32.partialorder %v279_v38, inf  ;;  %v292_v46 = vand.u32 2147483648, %v279_v38  ;;  %vm291_vm5 = vcmp.eq.f32.partialorder %v279_v38, 0.0 }
 0x1f4   :  { %v410_v39 = vpop.eup %409 }
 0x1f5   :  { %v281_v40 = vmul.f32 %v410_v39, %v278_v34 }
 0x1f7   :  { %v283_v42 = vsel %vm282_vm2, %v278_v34, %v281_v40 }
 0x1f8   :  { %v412_v43 = vpop.eup %411  ;;  %v286_v44 = vsel %vm284_vm3, %v285_v41, %v283_v42 }
 0x1f9   :  { %v288_v45 = vmul.f32 %v412_v43, %v279_v38  ;;  %294 = vst [vmem:[#allocation9] sm:$0xff] %v286_v44 }
 0x1fb   :  { %v290_v47 = vsel %vm289_vm4, %v279_v38, %v288_v45 }
 0x1fc   :  { %v293_v48 = vsel %vm291_vm5, %v292_v46, %v290_v47 }
 0x1fd   :  { %295 = vst [vmem:[#allocation9 + $0x8] sm:$0xff] %v293_v48 }
 0x1fe   :  { %484 = shalt.err (!%p481_p5)
}
 0x1ff   :  { %s507_s7 = smov 128   ;;  %s508_s8 = smov 8  }
 0x200   :  { %307 = dma.vmem_to_hbm [thread:$0]  %s302_s5, 256, %s553_s4, [#allocation5], %s507_s7, %s507_s7, %s508_s8  }
 0x201   :  { %497 = dma.done.wait [#allocation5], 256  }
 0x202   :  { %498 = vsyncadd [#allocation5], 4294967040 }
 0x203   :  { %311 = vsyncpa [#allocation4], 1 }
 0x204   :  { %312 = vsyncpa [#allocation7], 1 }
 0x205   :  { %313 = vsyncpa [#allocation5], 1 }

</bundles_post_ra>
